<compile_context>
chip_gen: v7x
topology: tpu7x:2x2x1
jax: 0.10.0
libtpu: 0.0.40
codegen_flags: <defaults>
</compile_context>

<pallas_src>
import functools

import jax
import jax.numpy as jnp
from jax import lax
from jax.experimental import pallas as pl
from jax.experimental.pallas import tpu as pltpu


def _diffconv_kernel(h_ref, a_ref, at_ref, w_ref, bias_ref, o_ref, *, K, Tt):
    # h_ref:    (Tt, n, b*d)       activations, batch folded into lanes
    # a_ref:    (Tt, n, n)         adjacency per time step
    # at_ref:   (Tt, n, n)         transposed adjacency (wrapper precomputed)
    # w_ref:    (2*(K+1), b*d, P)  kron(I_b, W) per (direction, power), padded
    # bias_ref: (1, P)             f32 bias row (tiled over batch, zero padded)
    # o_ref:    (Tt, n, P)         lane-dense output slab (P multiple of 128)
    bias = bias_ref[...]                                        # (1, P) f32

    def step(t, carry):
        h = h_ref[t]                                            # (n, b*d)
        a = a_ref[t]                                            # (n, n)
        a_t = at_ref[t]                                         # (n, n)

        # kk == 0: A^0 = I for both directions -> two projections of h.
        acc = jnp.dot(h, w_ref[0], preferred_element_type=jnp.float32)
        acc = acc + jnp.dot(h, w_ref[K + 1],
                            preferred_element_type=jnp.float32)

        # kk >= 1: propagate (one dense matmul per direction per power, all
        # batches in the lanes), then project with the padded block-diag W.
        p = h
        q = h
        for kk in range(1, K + 1):                              # static, K small
            p = jnp.dot(a, p,
                        preferred_element_type=jnp.float32).astype(h.dtype)
            q = jnp.dot(a_t, q,
                        preferred_element_type=jnp.float32).astype(h.dtype)
            acc = acc + jnp.dot(p, w_ref[kk],
                                preferred_element_type=jnp.float32)
            acc = acc + jnp.dot(q, w_ref[K + 1 + kk],
                                preferred_element_type=jnp.float32)

        o_ref[t] = (acc + bias).astype(o_ref.dtype)             # full-width vst
        return carry

    lax.fori_loop(0, Tt, step, 0, unroll=Tt <= 8)


def diffconv(H, A, w_forward, w_backward, bias, *, K, time_block=None):
    """H: (b, k, n, d), A: (k, n, n), w_*: (K+1, d, d), bias: (d,)."""
    b, k, n, d = H.shape
    bd = b * d
    P = ((bd + 127) // 128) * 128          # lane-dense output width (>= 128)
    dtype = H.dtype
    itemsize = jnp.dtype(dtype).itemsize

    # ---- wrapper-side layout plumbing (plain XLA, outside the kernel) ----
    Hf = jnp.transpose(H, (1, 2, 0, 3)).reshape(k, n, bd)       # (k, n, b*d)
    A_in = A.astype(dtype)
    A_T = jnp.swapaxes(A_in, 1, 2)                              # (k, n, n)

    eye_b = jnp.eye(b, dtype=jnp.float32)

    def blockdiag_pad(w):                                       # (d,d)->(bd,P)
        m = jnp.kron(eye_b, w.astype(jnp.float32))
        return jnp.pad(m, ((0, 0), (0, P - bd)))

    w_stack = jnp.stack(
        [blockdiag_pad(w_forward[j]) for j in range(K + 1)]
        + [blockdiag_pad(w_backward[j]) for j in range(K + 1)]).astype(dtype)

    bias_row = jnp.pad(jnp.tile(bias.astype(jnp.float32), b),
                       (0, P - bd)).reshape(1, P)

    # ---- time blocking: amortize per-grid-step overhead -------------------
    per_t = 2 * ((n * bd + 2 * n * n + n * P) * itemsize)       # dbl-buffered
    if time_block is None:
        time_block = max(1, min(k, (8 << 20) // max(per_t, 1)))
        while k % time_block:
            time_block -= 1
    Tt = time_block
    assert k % Tt == 0, "time_block must divide the number of time steps"
    grid = (k // Tt,)

    flops = (k * 2 * K * 2 * n * n * bd            # propagation matmuls
             + k * 2 * (K + 1) * 2 * n * bd * P)   # projection matmuls
    bytes_accessed = ((Hf.size + A_in.size + A_T.size + w_stack.size
                       + k * n * P) * itemsize + bias_row.size * 4)
    cost = pl.CostEstimate(flops=int(flops), transcendentals=0,
                           bytes_accessed=int(bytes_accessed))

    out_pad = pl.pallas_call(
        functools.partial(_diffconv_kernel, K=K, Tt=Tt),
        out_shape=jax.ShapeDtypeStruct((k, n, P), dtype),
        grid_spec=pltpu.PrefetchScalarGridSpec(
            num_scalar_prefetch=0,
            grid=grid,
            in_specs=[
                pl.BlockSpec((Tt, n, bd), lambda g: (g, 0, 0)),            # H
                pl.BlockSpec((Tt, n, n), lambda g: (g, 0, 0)),             # A
                pl.BlockSpec((Tt, n, n), lambda g: (g, 0, 0)),             # A^T
                pl.BlockSpec((2 * (K + 1), bd, P), lambda g: (0, 0, 0)),   # W
                pl.BlockSpec((1, P), lambda g: (0, 0)),                    # bias
            ],
            out_specs=pl.BlockSpec((Tt, n, P), lambda g: (g, 0, 0)),
        ),
        compiler_params=pltpu.CompilerParams(
            dimension_semantics=("parallel",),
            vmem_limit_bytes=32 * 1024 * 1024),
        cost_estimate=cost,
    )(Hf, A_in, A_T, w_stack, bias_row)

    # Unfold: slice away the lane padding and restore (b, k, n, d).
    out = out_pad[:, :, :bd].reshape(k, n, b, d)
    return jnp.transpose(out, (2, 0, 1, 3))


def diffconv_ref(H, A, w_forward, w_backward, bias, *, K):
    """Pure-JAX reference mirroring the PyTorch forward."""
    b, k, n, d = H.shape
    outs = []
    for t in range(k):
        A_t = A[t]
        H_t = H[:, t]                                   # (b, n, d)
        tmp = jnp.zeros((b, n, d), jnp.float32)
        A_k = jnp.eye(n, dtype=jnp.float32)
        for kk in range(K + 1):
            if kk > 0:
                A_k = A_k @ A_t
            H_f = H_t @ w_forward[kk]
            H_b = H_t @ w_backward[kk]
            H_f = jnp.einsum('ij,bjd->bid', A_k, H_f)
            H_b = jnp.einsum('ij,bjd->bid', A_k.T, H_b)
            tmp = tmp + H_f + H_b
        outs.append(tmp)
    out = jnp.stack(outs, axis=1)
    return out + bias


def xavier_uniform(key, shape, dtype=jnp.float32):
    fan_in, fan_out = shape[-2], shape[-1]
    limit = (6.0 / (fan_in + fan_out)) ** 0.5
    return jax.random.uniform(key, shape, dtype, minval=-limit, maxval=limit)


if __name__ == "__main__":
    # Small deterministic config: dim=32, K=2, batch=2, time=3, nodes=16.
    dim, K = 32, 2
    b, k, n = 2, 3, 16

    root = jax.random.PRNGKey(0)
    keys = jax.random.split(root, 4 + 2 * (K + 1))

    H = jax.random.normal(keys[0], (b, k, n, dim), jnp.float32)
    A = jax.random.uniform(keys[1], (k, n, n), jnp.float32)
    # Row-normalize adjacency (typical diffusion transition matrix).
    A = A / jnp.sum(A, axis=-1, keepdims=True)

    w_forward = jnp.stack(
        [xavier_uniform(keys[2 + i], (dim, dim)) for i in range(K + 1)])
    w_backward = jnp.stack(
        [xavier_uniform(keys[2 + (K + 1) + i], (dim, dim)) for i in range(K + 1)])
    bias = jnp.zeros((dim,), jnp.float32)

    out = diffconv(H, A, w_forward, w_backward, bias, K=K)
    out = jax.block_until_ready(out)

    ref = diffconv_ref(H, A, w_forward, w_backward, bias, K=K)
    assert out.shape == (b, k, n, dim)
    assert jnp.allclose(out, ref, atol=1e-4, rtol=1e-4), "mismatch vs reference"

    print("KERNEL_OK")
</pallas_src>

<mosaic_0001>
module attributes {stable_mosaic.version = 11 : i64} {
  func.func @_diffconv_kernel(%arg0: i32, %arg1: memref<3x16x64xf32, #tpu.memory_space<vmem>>, %arg2: memref<3x16x16xf32, #tpu.memory_space<vmem>>, %arg3: memref<3x16x16xf32, #tpu.memory_space<vmem>>, %arg4: memref<6x64x128xf32, #tpu.memory_space<vmem>>, %arg5: memref<1x128xf32, #tpu.memory_space<vmem>>, %arg6: memref<3x16x128xf32, #tpu.memory_space<vmem>>) attributes {dimension_semantics = [#tpu.dimension_semantics<parallel>], iteration_bounds = array<i64: 1>, scalar_prefetch = 0 : i64, scratch_operands = 0 : i64, tpu.core_type = #tpu.core_type<tc>, window_params = [{transform_indices = @transform_0, window_bounds = array<i64: 3, 16, 64>}, {transform_indices = @transform_1, window_bounds = array<i64: 3, 16, 16>}, {transform_indices = @transform_2, window_bounds = array<i64: 3, 16, 16>}, {pipeline_mode = #tpu.pipeline_mode<synchronous>, transform_indices = @transform_3, window_bounds = array<i64: 6, 64, 128>}, {pipeline_mode = #tpu.pipeline_mode<synchronous>, transform_indices = @transform_4, window_bounds = array<i64: 1, 128>}, {transform_indices = @transform_5, window_bounds = array<i64: 3, 16, 128>}]} {
    %c0 = arith.constant 0 : index
    %c0_0 = arith.constant 0 : index
    %0 = vector.load %arg5[%c0, %c0_0] : memref<1x128xf32, #tpu.memory_space<vmem>>, vector<1x128xf32>
    %c0_i32 = arith.constant 0 : i32
    %1 = arith.index_cast %c0_i32 : i32 to index
    %c0_1 = arith.constant 0 : index
    %c0_2 = arith.constant 0 : index
    %2 = vector.load %arg1[%1, %c0_1, %c0_2] : memref<3x16x64xf32, #tpu.memory_space<vmem>>, vector<1x16x64xf32>
    %3 = vector.shape_cast %2 : vector<1x16x64xf32> to vector<16x64xf32>
    %4 = arith.index_cast %c0_i32 : i32 to index
    %c0_3 = arith.constant 0 : index
    %c0_4 = arith.constant 0 : index
    %5 = vector.load %arg2[%4, %c0_3, %c0_4] : memref<3x16x16xf32, #tpu.memory_space<vmem>>, vector<1x16x16xf32>
    %6 = vector.shape_cast %5 : vector<1x16x16xf32> to vector<16x16xf32>
    %7 = arith.index_cast %c0_i32 : i32 to index
    %c0_5 = arith.constant 0 : index
    %c0_6 = arith.constant 0 : index
    %8 = vector.load %arg3[%7, %c0_5, %c0_6] : memref<3x16x16xf32, #tpu.memory_space<vmem>>, vector<1x16x16xf32>
    %9 = vector.shape_cast %8 : vector<1x16x16xf32> to vector<16x16xf32>
    %c0_7 = arith.constant 0 : index
    %c0_8 = arith.constant 0 : index
    %c0_9 = arith.constant 0 : index
    %10 = vector.load %arg4[%c0_7, %c0_8, %c0_9] : memref<6x64x128xf32, #tpu.memory_space<vmem>>, vector<1x64x128xf32>
    %11 = vector.shape_cast %10 : vector<1x64x128xf32> to vector<64x128xf32>
    %cst = arith.constant dense<0.000000e+00> : vector<16x128xf32>
    %12 = tpu.matmul %3, %11, %cst {dimension_numbers = #tpu.dot_dimension_numbers<[1], [0], [0], [1], [0, 0, 1, 1], [], []>} : vector<16x64xf32>, vector<64x128xf32>, vector<16x128xf32> -> vector<16x128xf32>
    %c3 = arith.constant 3 : index
    %c0_10 = arith.constant 0 : index
    %c0_11 = arith.constant 0 : index
    %13 = vector.load %arg4[%c3, %c0_10, %c0_11] : memref<6x64x128xf32, #tpu.memory_space<vmem>>, vector<1x64x128xf32>
    %14 = vector.shape_cast %13 : vector<1x64x128xf32> to vector<64x128xf32>
    %cst_12 = arith.constant dense<0.000000e+00> : vector<16x128xf32>
    %15 = tpu.matmul %3, %14, %cst_12 {dimension_numbers = #tpu.dot_dimension_numbers<[1], [0], [0], [1], [0, 0, 1, 1], [], []>} : vector<16x64xf32>, vector<64x128xf32>, vector<16x128xf32> -> vector<16x128xf32>
    %16 = arith.addf %12, %15 : vector<16x128xf32>
    %cst_13 = arith.constant dense<0.000000e+00> : vector<16x64xf32>
    %17 = tpu.matmul %6, %3, %cst_13 {dimension_numbers = #tpu.dot_dimension_numbers<[1], [0], [0], [1], [0, 0, 1, 1], [], []>} : vector<16x16xf32>, vector<16x64xf32>, vector<16x64xf32> -> vector<16x64xf32>
    %cst_14 = arith.constant dense<0.000000e+00> : vector<16x64xf32>
    %18 = tpu.matmul %9, %3, %cst_14 {dimension_numbers = #tpu.dot_dimension_numbers<[1], [0], [0], [1], [0, 0, 1, 1], [], []>} : vector<16x16xf32>, vector<16x64xf32>, vector<16x64xf32> -> vector<16x64xf32>
    %c1 = arith.constant 1 : index
    %c0_15 = arith.constant 0 : index
    %c0_16 = arith.constant 0 : index
    %19 = vector.load %arg4[%c1, %c0_15, %c0_16] : memref<6x64x128xf32, #tpu.memory_space<vmem>>, vector<1x64x128xf32>
    %20 = vector.shape_cast %19 : vector<1x64x128xf32> to vector<64x128xf32>
    %cst_17 = arith.constant dense<0.000000e+00> : vector<16x128xf32>
    %21 = tpu.matmul %17, %20, %cst_17 {dimension_numbers = #tpu.dot_dimension_numbers<[1], [0], [0], [1], [0, 0, 1, 1], [], []>} : vector<16x64xf32>, vector<64x128xf32>, vector<16x128xf32> -> vector<16x128xf32>
    %22 = arith.addf %16, %21 : vector<16x128xf32>
    %c4 = arith.constant 4 : index
    %c0_18 = arith.constant 0 : index
    %c0_19 = arith.constant 0 : index
    %23 = vector.load %arg4[%c4, %c0_18, %c0_19] : memref<6x64x128xf32, #tpu.memory_space<vmem>>, vector<1x64x128xf32>
    %24 = vector.shape_cast %23 : vector<1x64x128xf32> to vector<64x128xf32>
    %cst_20 = arith.constant dense<0.000000e+00> : vector<16x128xf32>
    %25 = tpu.matmul %18, %24, %cst_20 {dimension_numbers = #tpu.dot_dimension_numbers<[1], [0], [0], [1], [0, 0, 1, 1], [], []>} : vector<16x64xf32>, vector<64x128xf32>, vector<16x128xf32> -> vector<16x128xf32>
    %26 = arith.addf %22, %25 : vector<16x128xf32>
    %cst_21 = arith.constant dense<0.000000e+00> : vector<16x64xf32>
    %27 = tpu.matmul %6, %17, %cst_21 {dimension_numbers = #tpu.dot_dimension_numbers<[1], [0], [0], [1], [0, 0, 1, 1], [], []>} : vector<16x16xf32>, vector<16x64xf32>, vector<16x64xf32> -> vector<16x64xf32>
    %cst_22 = arith.constant dense<0.000000e+00> : vector<16x64xf32>
    %28 = tpu.matmul %9, %18, %cst_22 {dimension_numbers = #tpu.dot_dimension_numbers<[1], [0], [0], [1], [0, 0, 1, 1], [], []>} : vector<16x16xf32>, vector<16x64xf32>, vector<16x64xf32> -> vector<16x64xf32>
    %c2 = arith.constant 2 : index
    %c0_23 = arith.constant 0 : index
    %c0_24 = arith.constant 0 : index
    %29 = vector.load %arg4[%c2, %c0_23, %c0_24] : memref<6x64x128xf32, #tpu.memory_space<vmem>>, vector<1x64x128xf32>
    %30 = vector.shape_cast %29 : vector<1x64x128xf32> to vector<64x128xf32>
    %cst_25 = arith.constant dense<0.000000e+00> : vector<16x128xf32>
    %31 = tpu.matmul %27, %30, %cst_25 {dimension_numbers = #tpu.dot_dimension_numbers<[1], [0], [0], [1], [0, 0, 1, 1], [], []>} : vector<16x64xf32>, vector<64x128xf32>, vector<16x128xf32> -> vector<16x128xf32>
    %32 = arith.addf %26, %31 : vector<16x128xf32>
    %c5 = arith.constant 5 : index
    %c0_26 = arith.constant 0 : index
    %c0_27 = arith.constant 0 : index
    %33 = vector.load %arg4[%c5, %c0_26, %c0_27] : memref<6x64x128xf32, #tpu.memory_space<vmem>>, vector<1x64x128xf32>
    %34 = vector.shape_cast %33 : vector<1x64x128xf32> to vector<64x128xf32>
    %cst_28 = arith.constant dense<0.000000e+00> : vector<16x128xf32>
    %35 = tpu.matmul %28, %34, %cst_28 {dimension_numbers = #tpu.dot_dimension_numbers<[1], [0], [0], [1], [0, 0, 1, 1], [], []>} : vector<16x64xf32>, vector<64x128xf32>, vector<16x128xf32> -> vector<16x128xf32>
    %36 = arith.addf %32, %35 : vector<16x128xf32>
    %37 = vector.broadcast %0 : vector<1x128xf32> to vector<16x128xf32>
    %38 = arith.addf %36, %37 : vector<16x128xf32>
    %39 = arith.index_cast %c0_i32 : i32 to index
    %c0_29 = arith.constant 0 : index
    %c0_30 = arith.constant 0 : index
    %40 = vector.load %arg6[%39, %c0_29, %c0_30] : memref<3x16x128xf32, #tpu.memory_space<vmem>>, vector<1x16x128xf32>
    %41 = vector.shape_cast %40 : vector<1x16x128xf32> to vector<16x128xf32>
    %42 = vector.shape_cast %38 : vector<16x128xf32> to vector<1x16x128xf32>
    tpu.vector_store %arg6[%39, %c0_29, %c0_30], %42 {strides = array<i32>} : memref<3x16x128xf32, #tpu.memory_space<vmem>>, vector<1x16x128xf32>,
    %c1_i32 = arith.constant 1 : i32
    %43 = arith.index_cast %c1_i32 : i32 to index
    %c0_31 = arith.constant 0 : index
    %c0_32 = arith.constant 0 : index
    %44 = vector.load %arg1[%43, %c0_31, %c0_32] : memref<3x16x64xf32, #tpu.memory_space<vmem>>, vector<1x16x64xf32>
    %45 = vector.shape_cast %44 : vector<1x16x64xf32> to vector<16x64xf32>
    %46 = arith.index_cast %c1_i32 : i32 to index
    %c0_33 = arith.constant 0 : index
    %c0_34 = arith.constant 0 : index
    %47 = vector.load %arg2[%46, %c0_33, %c0_34] : memref<3x16x16xf32, #tpu.memory_space<vmem>>, vector<1x16x16xf32>
    %48 = vector.shape_cast %47 : vector<1x16x16xf32> to vector<16x16xf32>
    %49 = arith.index_cast %c1_i32 : i32 to index
    %c0_35 = arith.constant 0 : index
    %c0_36 = arith.constant 0 : index
    %50 = vector.load %arg3[%49, %c0_35, %c0_36] : memref<3x16x16xf32, #tpu.memory_space<vmem>>, vector<1x16x16xf32>
    %51 = vector.shape_cast %50 : vector<1x16x16xf32> to vector<16x16xf32>
    %c0_37 = arith.constant 0 : index
    %c0_38 = arith.constant 0 : index
    %c0_39 = arith.constant 0 : index
    %52 = vector.load %arg4[%c0_37, %c0_38, %c0_39] : memref<6x64x128xf32, #tpu.memory_space<vmem>>, vector<1x64x128xf32>
    %53 = vector.shape_cast %52 : vector<1x64x128xf32> to vector<64x128xf32>
    %cst_40 = arith.constant dense<0.000000e+00> : vector<16x128xf32>
    %54 = tpu.matmul %45, %53, %cst_40 {dimension_numbers = #tpu.dot_dimension_numbers<[1], [0], [0], [1], [0, 0, 1, 1], [], []>} : vector<16x64xf32>, vector<64x128xf32>, vector<16x128xf32> -> vector<16x128xf32>
    %c3_41 = arith.constant 3 : index
    %c0_42 = arith.constant 0 : index
    %c0_43 = arith.constant 0 : index
    %55 = vector.load %arg4[%c3_41, %c0_42, %c0_43] : memref<6x64x128xf32, #tpu.memory_space<vmem>>, vector<1x64x128xf32>
    %56 = vector.shape_cast %55 : vector<1x64x128xf32> to vector<64x128xf32>
    %cst_44 = arith.constant dense<0.000000e+00> : vector<16x128xf32>
    %57 = tpu.matmul %45, %56, %cst_44 {dimension_numbers = #tpu.dot_dimension_numbers<[1], [0], [0], [1], [0, 0, 1, 1], [], []>} : vector<16x64xf32>, vector<64x128xf32>, vector<16x128xf32> -> vector<16x128xf32>
    %58 = arith.addf %54, %57 : vector<16x128xf32>
    %cst_45 = arith.constant dense<0.000000e+00> : vector<16x64xf32>
    %59 = tpu.matmul %48, %45, %cst_45 {dimension_numbers = #tpu.dot_dimension_numbers<[1], [0], [0], [1], [0, 0, 1, 1], [], []>} : vector<16x16xf32>, vector<16x64xf32>, vector<16x64xf32> -> vector<16x64xf32>
    %cst_46 = arith.constant dense<0.000000e+00> : vector<16x64xf32>
    %60 = tpu.matmul %51, %45, %cst_46 {dimension_numbers = #tpu.dot_dimension_numbers<[1], [0], [0], [1], [0, 0, 1, 1], [], []>} : vector<16x16xf32>, vector<16x64xf32>, vector<16x64xf32> -> vector<16x64xf32>
    %c1_47 = arith.constant 1 : index
    %c0_48 = arith.constant 0 : index
    %c0_49 = arith.constant 0 : index
    %61 = vector.load %arg4[%c1_47, %c0_48, %c0_49] : memref<6x64x128xf32, #tpu.memory_space<vmem>>, vector<1x64x128xf32>
    %62 = vector.shape_cast %61 : vector<1x64x128xf32> to vector<64x128xf32>
    %cst_50 = arith.constant dense<0.000000e+00> : vector<16x128xf32>
    %63 = tpu.matmul %59, %62, %cst_50 {dimension_numbers = #tpu.dot_dimension_numbers<[1], [0], [0], [1], [0, 0, 1, 1], [], []>} : vector<16x64xf32>, vector<64x128xf32>, vector<16x128xf32> -> vector<16x128xf32>
    %64 = arith.addf %58, %63 : vector<16x128xf32>
    %c4_51 = arith.constant 4 : index
    %c0_52 = arith.constant 0 : index
    %c0_53 = arith.constant 0 : index
    %65 = vector.load %arg4[%c4_51, %c0_52, %c0_53] : memref<6x64x128xf32, #tpu.memory_space<vmem>>, vector<1x64x128xf32>
    %66 = vector.shape_cast %65 : vector<1x64x128xf32> to vector<64x128xf32>
    %cst_54 = arith.constant dense<0.000000e+00> : vector<16x128xf32>
    %67 = tpu.matmul %60, %66, %cst_54 {dimension_numbers = #tpu.dot_dimension_numbers<[1], [0], [0], [1], [0, 0, 1, 1], [], []>} : vector<16x64xf32>, vector<64x128xf32>, vector<16x128xf32> -> vector<16x128xf32>
    %68 = arith.addf %64, %67 : vector<16x128xf32>
    %cst_55 = arith.constant dense<0.000000e+00> : vector<16x64xf32>
    %69 = tpu.matmul %48, %59, %cst_55 {dimension_numbers = #tpu.dot_dimension_numbers<[1], [0], [0], [1], [0, 0, 1, 1], [], []>} : vector<16x16xf32>, vector<16x64xf32>, vector<16x64xf32> -> vector<16x64xf32>
    %cst_56 = arith.constant dense<0.000000e+00> : vector<16x64xf32>
    %70 = tpu.matmul %51, %60, %cst_56 {dimension_numbers = #tpu.dot_dimension_numbers<[1], [0], [0], [1], [0, 0, 1, 1], [], []>} : vector<16x16xf32>, vector<16x64xf32>, vector<16x64xf32> -> vector<16x64xf32>
    %c2_57 = arith.constant 2 : index
    %c0_58 = arith.constant 0 : index
    %c0_59 = arith.constant 0 : index
    %71 = vector.load %arg4[%c2_57, %c0_58, %c0_59] : memref<6x64x128xf32, #tpu.memory_space<vmem>>, vector<1x64x128xf32>
    %72 = vector.shape_cast %71 : vector<1x64x128xf32> to vector<64x128xf32>
    %cst_60 = arith.constant dense<0.000000e+00> : vector<16x128xf32>
    %73 = tpu.matmul %69, %72, %cst_60 {dimension_numbers = #tpu.dot_dimension_numbers<[1], [0], [0], [1], [0, 0, 1, 1], [], []>} : vector<16x64xf32>, vector<64x128xf32>, vector<16x128xf32> -> vector<16x128xf32>
    %74 = arith.addf %68, %73 : vector<16x128xf32>
    %c5_61 = arith.constant 5 : index
    %c0_62 = arith.constant 0 : index
    %c0_63 = arith.constant 0 : index
    %75 = vector.load %arg4[%c5_61, %c0_62, %c0_63] : memref<6x64x128xf32, #tpu.memory_space<vmem>>, vector<1x64x128xf32>
    %76 = vector.shape_cast %75 : vector<1x64x128xf32> to vector<64x128xf32>
    %cst_64 = arith.constant dense<0.000000e+00> : vector<16x128xf32>
    %77 = tpu.matmul %70, %76, %cst_64 {dimension_numbers = #tpu.dot_dimension_numbers<[1], [0], [0], [1], [0, 0, 1, 1], [], []>} : vector<16x64xf32>, vector<64x128xf32>, vector<16x128xf32> -> vector<16x128xf32>
    %78 = arith.addf %74, %77 : vector<16x128xf32>
    %79 = vector.broadcast %0 : vector<1x128xf32> to vector<16x128xf32>
    %80 = arith.addf %78, %79 : vector<16x128xf32>
    %81 = arith.index_cast %c1_i32 : i32 to index
    %c0_65 = arith.constant 0 : index
    %c0_66 = arith.constant 0 : index
    %82 = vector.load %arg6[%81, %c0_65, %c0_66] : memref<3x16x128xf32, #tpu.memory_space<vmem>>, vector<1x16x128xf32>
    %83 = vector.shape_cast %82 : vector<1x16x128xf32> to vector<16x128xf32>
    %84 = vector.shape_cast %80 : vector<16x128xf32> to vector<1x16x128xf32>
    tpu.vector_store %arg6[%81, %c0_65, %c0_66], %84 {strides = array<i32>} : memref<3x16x128xf32, #tpu.memory_space<vmem>>, vector<1x16x128xf32>,
    %c2_i32 = arith.constant 2 : i32
    %85 = arith.index_cast %c2_i32 : i32 to index
    %c0_67 = arith.constant 0 : index
    %c0_68 = arith.constant 0 : index
    %86 = vector.load %arg1[%85, %c0_67, %c0_68] : memref<3x16x64xf32, #tpu.memory_space<vmem>>, vector<1x16x64xf32>
    %87 = vector.shape_cast %86 : vector<1x16x64xf32> to vector<16x64xf32>
    %88 = arith.index_cast %c2_i32 : i32 to index
    %c0_69 = arith.constant 0 : index
    %c0_70 = arith.constant 0 : index
    %89 = vector.load %arg2[%88, %c0_69, %c0_70] : memref<3x16x16xf32, #tpu.memory_space<vmem>>, vector<1x16x16xf32>
    %90 = vector.shape_cast %89 : vector<1x16x16xf32> to vector<16x16xf32>
    %91 = arith.index_cast %c2_i32 : i32 to index
    %c0_71 = arith.constant 0 : index
    %c0_72 = arith.constant 0 : index
    %92 = vector.load %arg3[%91, %c0_71, %c0_72] : memref<3x16x16xf32, #tpu.memory_space<vmem>>, vector<1x16x16xf32>
    %93 = vector.shape_cast %92 : vector<1x16x16xf32> to vector<16x16xf32>
    %c0_73 = arith.constant 0 : index
    %c0_74 = arith.constant 0 : index
    %c0_75 = arith.constant 0 : index
    %94 = vector.load %arg4[%c0_73, %c0_74, %c0_75] : memref<6x64x128xf32, #tpu.memory_space<vmem>>, vector<1x64x128xf32>
    %95 = vector.shape_cast %94 : vector<1x64x128xf32> to vector<64x128xf32>
    %cst_76 = arith.constant dense<0.000000e+00> : vector<16x128xf32>
    %96 = tpu.matmul %87, %95, %cst_76 {dimension_numbers = #tpu.dot_dimension_numbers<[1], [0], [0], [1], [0, 0, 1, 1], [], []>} : vector<16x64xf32>, vector<64x128xf32>, vector<16x128xf32> -> vector<16x128xf32>
    %c3_77 = arith.constant 3 : index
    %c0_78 = arith.constant 0 : index
    %c0_79 = arith.constant 0 : index
    %97 = vector.load %arg4[%c3_77, %c0_78, %c0_79] : memref<6x64x128xf32, #tpu.memory_space<vmem>>, vector<1x64x128xf32>
    %98 = vector.shape_cast %97 : vector<1x64x128xf32> to vector<64x128xf32>
    %cst_80 = arith.constant dense<0.000000e+00> : vector<16x128xf32>
    %99 = tpu.matmul %87, %98, %cst_80 {dimension_numbers = #tpu.dot_dimension_numbers<[1], [0], [0], [1], [0, 0, 1, 1], [], []>} : vector<16x64xf32>, vector<64x128xf32>, vector<16x128xf32> -> vector<16x128xf32>
    %100 = arith.addf %96, %99 : vector<16x128xf32>
    %cst_81 = arith.constant dense<0.000000e+00> : vector<16x64xf32>
    %101 = tpu.matmul %90, %87, %cst_81 {dimension_numbers = #tpu.dot_dimension_numbers<[1], [0], [0], [1], [0, 0, 1, 1], [], []>} : vector<16x16xf32>, vector<16x64xf32>, vector<16x64xf32> -> vector<16x64xf32>
    %cst_82 = arith.constant dense<0.000000e+00> : vector<16x64xf32>
    %102 = tpu.matmul %93, %87, %cst_82 {dimension_numbers = #tpu.dot_dimension_numbers<[1], [0], [0], [1], [0, 0, 1, 1], [], []>} : vector<16x16xf32>, vector<16x64xf32>, vector<16x64xf32> -> vector<16x64xf32>
    %c1_83 = arith.constant 1 : index
    %c0_84 = arith.constant 0 : index
    %c0_85 = arith.constant 0 : index
    %103 = vector.load %arg4[%c1_83, %c0_84, %c0_85] : memref<6x64x128xf32, #tpu.memory_space<vmem>>, vector<1x64x128xf32>
    %104 = vector.shape_cast %103 : vector<1x64x128xf32> to vector<64x128xf32>
    %cst_86 = arith.constant dense<0.000000e+00> : vector<16x128xf32>
    %105 = tpu.matmul %101, %104, %cst_86 {dimension_numbers = #tpu.dot_dimension_numbers<[1], [0], [0], [1], [0, 0, 1, 1], [], []>} : vector<16x64xf32>, vector<64x128xf32>, vector<16x128xf32> -> vector<16x128xf32>
    %106 = arith.addf %100, %105 : vector<16x128xf32>
    %c4_87 = arith.constant 4 : index
    %c0_88 = arith.constant 0 : index
    %c0_89 = arith.constant 0 : index
    %107 = vector.load %arg4[%c4_87, %c0_88, %c0_89] : memref<6x64x128xf32, #tpu.memory_space<vmem>>, vector<1x64x128xf32>
    %108 = vector.shape_cast %107 : vector<1x64x128xf32> to vector<64x128xf32>
    %cst_90 = arith.constant dense<0.000000e+00> : vector<16x128xf32>
    %109 = tpu.matmul %102, %108, %cst_90 {dimension_numbers = #tpu.dot_dimension_numbers<[1], [0], [0], [1], [0, 0, 1, 1], [], []>} : vector<16x64xf32>, vector<64x128xf32>, vector<16x128xf32> -> vector<16x128xf32>
    %110 = arith.addf %106, %109 : vector<16x128xf32>
    %cst_91 = arith.constant dense<0.000000e+00> : vector<16x64xf32>
    %111 = tpu.matmul %90, %101, %cst_91 {dimension_numbers = #tpu.dot_dimension_numbers<[1], [0], [0], [1], [0, 0, 1, 1], [], []>} : vector<16x16xf32>, vector<16x64xf32>, vector<16x64xf32> -> vector<16x64xf32>
    %cst_92 = arith.constant dense<0.000000e+00> : vector<16x64xf32>
    %112 = tpu.matmul %93, %102, %cst_92 {dimension_numbers = #tpu.dot_dimension_numbers<[1], [0], [0], [1], [0, 0, 1, 1], [], []>} : vector<16x16xf32>, vector<16x64xf32>, vector<16x64xf32> -> vector<16x64xf32>
    %c2_93 = arith.constant 2 : index
    %c0_94 = arith.constant 0 : index
    %c0_95 = arith.constant 0 : index
    %113 = vector.load %arg4[%c2_93, %c0_94, %c0_95] : memref<6x64x128xf32, #tpu.memory_space<vmem>>, vector<1x64x128xf32>
    %114 = vector.shape_cast %113 : vector<1x64x128xf32> to vector<64x128xf32>
    %cst_96 = arith.constant dense<0.000000e+00> : vector<16x128xf32>
    %115 = tpu.matmul %111, %114, %cst_96 {dimension_numbers = #tpu.dot_dimension_numbers<[1], [0], [0], [1], [0, 0, 1, 1], [], []>} : vector<16x64xf32>, vector<64x128xf32>, vector<16x128xf32> -> vector<16x128xf32>
    %116 = arith.addf %110, %115 : vector<16x128xf32>
    %c5_97 = arith.constant 5 : index
    %c0_98 = arith.constant 0 : index
    %c0_99 = arith.constant 0 : index
    %117 = vector.load %arg4[%c5_97, %c0_98, %c0_99] : memref<6x64x128xf32, #tpu.memory_space<vmem>>, vector<1x64x128xf32>
    %118 = vector.shape_cast %117 : vector<1x64x128xf32> to vector<64x128xf32>
    %cst_100 = arith.constant dense<0.000000e+00> : vector<16x128xf32>
    %119 = tpu.matmul %112, %118, %cst_100 {dimension_numbers = #tpu.dot_dimension_numbers<[1], [0], [0], [1], [0, 0, 1, 1], [], []>} : vector<16x64xf32>, vector<64x128xf32>, vector<16x128xf32> -> vector<16x128xf32>
    %120 = arith.addf %116, %119 : vector<16x128xf32>
    %121 = vector.broadcast %0 : vector<1x128xf32> to vector<16x128xf32>
    %122 = arith.addf %120, %121 : vector<16x128xf32>
    %123 = arith.index_cast %c2_i32 : i32 to index
    %c0_101 = arith.constant 0 : index
    %c0_102 = arith.constant 0 : index
    %124 = vector.load %arg6[%123, %c0_101, %c0_102] : memref<3x16x128xf32, #tpu.memory_space<vmem>>, vector<1x16x128xf32>
    %125 = vector.shape_cast %124 : vector<1x16x128xf32> to vector<16x128xf32>
    %126 = vector.shape_cast %122 : vector<16x128xf32> to vector<1x16x128xf32>
    tpu.vector_store %arg6[%123, %c0_101, %c0_102], %126 {strides = array<i32>} : memref<3x16x128xf32, #tpu.memory_space<vmem>>, vector<1x16x128xf32>,
    %c3_i32 = arith.constant 3 : i32
    return
  }
  func.func @transform_0(%arg0: i32) -> (i32, i32, i32) {
    %c0_i32 = arith.constant 0 : i32
    %c0_i32_0 = arith.constant 0 : i32
    %c0_i32_1 = arith.constant 0 : i32
    return %arg0, %c0_i32, %c0_i32_0 : i32, i32, i32
  }
  func.func @transform_1(%arg0: i32) -> (i32, i32, i32) {
    %c0_i32 = arith.constant 0 : i32
    %c0_i32_0 = arith.constant 0 : i32
    %c0_i32_1 = arith.constant 0 : i32
    return %arg0, %c0_i32, %c0_i32_0 : i32, i32, i32
  }
  func.func @transform_2(%arg0: i32) -> (i32, i32, i32) {
    %c0_i32 = arith.constant 0 : i32
    %c0_i32_0 = arith.constant 0 : i32
    %c0_i32_1 = arith.constant 0 : i32
    return %arg0, %c0_i32, %c0_i32_0 : i32, i32, i32
  }
  func.func @transform_3(%arg0: i32) -> (i32, i32, i32) {
    %c0_i32 = arith.constant 0 : i32
    %c0_i32_0 = arith.constant 0 : i32
    %c0_i32_1 = arith.constant 0 : i32
    %c0_i32_2 = arith.constant 0 : i32
    return %c0_i32, %c0_i32_0, %c0_i32_1 : i32, i32, i32
  }
  func.func @transform_4(%arg0: i32) -> (i32, i32) {
    %c0_i32 = arith.constant 0 : i32
    %c0_i32_0 = arith.constant 0 : i32
    %c0_i32_1 = arith.constant 0 : i32
    return %c0_i32, %c0_i32_0 : i32, i32
  }
  func.func @transform_5(%arg0: i32) -> (i32, i32, i32) {
    %c0_i32 = arith.constant 0 : i32
    %c0_i32_0 = arith.constant 0 : i32
    %c0_i32_1 = arith.constant 0 : i32
    return %arg0, %c0_i32, %c0_i32_0 : i32, i32, i32
  }
}

</mosaic_0001>

<bundles_post_ra>
// kernel: tpu_custom_call.1
= control target key start
LH: loop header
LB: loop body
LE: loop exit
PB: predicated region body
PF: predicated region fallthrough
CT: control target
= control target key end

     0   :  { %10 = vsyncpa [#allocation3], 0  ;;  %s4321_s0 = inlined_call_operand.hbm [shape: f32[3,16,64], index: 0, kind: input, shape index: {}]   ;;  %s4322_s1 = inlined_call_operand.hbm [shape: f32[3,16,16], index: 1, kind: input, shape index: {}]   ;;  %s4323_s2 = inlined_call_operand.hbm [shape: f32[3,16,16], index: 2, kind: input, shape index: {}]   ;;  %s4324_s3 = inlined_call_operand.hbm [shape: f32[6,64,128], index: 3, kind: input, shape index: {}]   ;;  %s4325_s4 = inlined_call_operand.vmem [shape: f32[1,128], index: 4, kind: input, shape index: {}]   ;;  %s4326_s5 = inlined_call_operand.hbm [shape: f32[3,16,128], index: 5, kind: output, shape index: {}]  }
   0x1   :  { %11 = vsyncpa [#allocation6], 0 }
   0x2   :  { %12 = vsyncpa [#allocation9], 0 }
   0x3   :  { %13 = vsyncpa [#allocation4], 0  ;;  %s3897_s18 = smov [#allocation5]   ;;  %s3898_s20 = smov [#allocation2]  }
   0x4   :  { %s31_s19 = sshll.u32 %s3897_s18, 4  ;;  %s19_s21 = sshll.u32 %s3898_s20, 4  ;;  %s32_s19 = int_to_ptr.vmem [resolvable:$true] %s31_s19  ;;  %s3934_s21 = int_to_ptr.vmem [resolvable:$true] %s19_s21 }
   0x5   :  { %s3779_s24 = scalar_lea.hbm %s4322_s1, 768 }
   0x6   :  { %p3780_p0 = scmp.ne.s32.totalorder %s4322_s1, %s3779_s24  ;;  %p3783_p1 = scmp.lt.u32.totalorder %s3779_s24, %s4322_s1 }
   0x8   :  { %p3785_p2 = pnand %p3783_p1, %p3780_p0 }
   0xa   :  { %3788 = shalt.err (!%p3785_p2)
}
   0xb   :  { %s3789_s29 = scalar_lea.vmem %s32_s19, 768  ;;  %p3794_p4 = scmp.lt.s32.totalorder %s32_s19, %s32_s19 }
   0xc   :  { %p3790_p3 = scmp.ne.s32.totalorder %s32_s19, %s3789_s29  ;;  %p3795_p5 = scmp.lt.s32.totalorder %s3789_s29, %s3789_s29 }
   0xe   :  { %p3796_p6 = por %p3795_p5, %p3794_p4 }
  0x10   :  { %p3797_p7 = pnand %p3796_p6, %p3790_p3 }
  0x12   :  { %3800 = shalt.err (!%p3797_p7)
}
  0x13   :  { %s3899_s30 = smov 128   ;;  %s3900_s6 = smov 8  }
  0x14   :  { %37 = dma.hbm_to_vmem [thread:$0]  %s4322_s1, 768, %s32_s19, [#allocation6], %s3899_s30, %s3899_s30, %s3900_s6  }
  0x15   :  { %s3801_s11 = scalar_lea.hbm %s4321_s0, 768 }
  0x16   :  { %p3802_p8 = scmp.ne.s32.totalorder %s4321_s0, %s3801_s11  ;;  %p3805_p9 = scmp.lt.u32.totalorder %s3801_s11, %s4321_s0 }
  0x18   :  { %p3807_p10 = pnand %p3805_p9, %p3802_p8 }
  0x1a   :  { %3810 = shalt.err (!%p3807_p10)
}
  0x1b   :  { %s3811_s16 = scalar_lea.vmem %s3934_s21, 768  ;;  %p3816_p12 = scmp.lt.s32.totalorder %s3934_s21, %s3934_s21 }
  0x1c   :  { %p3812_p11 = scmp.ne.s32.totalorder %s3934_s21, %s3811_s16  ;;  %p3817_p13 = scmp.lt.s32.totalorder %s3811_s16, %s3811_s16 }
  0x1e   :  { %p3818_p0 = por %p3817_p13, %p3816_p12 }
  0x20   :  { %p3819_p1 = pnand %p3818_p0, %p3812_p11 }
  0x22   :  { %3822 = shalt.err (!%p3819_p1)
}
  0x23   :  { %25 = dma.hbm_to_vmem [thread:$0]  %s4321_s0, 768, %s3934_s21, [#allocation3], %s3899_s30, %s3899_s30, %s3900_s6  }
  0x24   :  { %s3901_s18 = smov [#allocation7]   ;;  %s3902_s20 = smov [#allocation8]  }
  0x25   :  { %s43_s19 = sshll.u32 %s3901_s18, 4  ;;  %s55_s22 = sshll.u32 %s3902_s20, 4  ;;  %s44_s19 = int_to_ptr.vmem [resolvable:$true] %s43_s19  ;;  %s3971_s22 = int_to_ptr.vmem [resolvable:$true] %s55_s22 }
  0x26   :  { %s3823_s25 = scalar_lea.hbm %s4323_s2, 768 }
  0x27   :  { %p3824_p2 = scmp.ne.s32.totalorder %s4323_s2, %s3823_s25  ;;  %p3827_p3 = scmp.lt.u32.totalorder %s3823_s25, %s4323_s2 }
  0x29   :  { %p3829_p4 = pnand %p3827_p3, %p3824_p2 }
  0x2b   :  { %3832 = shalt.err (!%p3829_p4)
}
  0x2c   :  { %s3833_s0 = scalar_lea.vmem %s44_s19, 768  ;;  %p3838_p6 = scmp.lt.s32.totalorder %s44_s19, %s44_s19 }
  0x2d   :  { %p3834_p5 = scmp.ne.s32.totalorder %s44_s19, %s3833_s0  ;;  %p3839_p7 = scmp.lt.s32.totalorder %s3833_s0, %s3833_s0 }
  0x2f   :  { %p3840_p8 = por %p3839_p7, %p3838_p6 }
  0x31   :  { %p3841_p9 = pnand %p3840_p8, %p3834_p5 }
  0x33   :  { %3844 = shalt.err (!%p3841_p9)
}
  0x34   :  { %49 = dma.hbm_to_vmem [thread:$0]  %s4323_s2, 768, %s44_s19, [#allocation6], %s3899_s30, %s3899_s30, %s3900_s6  }
  0x35   :  { %s3845_s10 = scalar_lea.hbm %s4324_s3, 6144 }
  0x36   :  { %p3846_p10 = scmp.ne.s32.totalorder %s4324_s3, %s3845_s10  ;;  %p3849_p11 = scmp.lt.u32.totalorder %s3845_s10, %s4324_s3 }
  0x38   :  { %p3851_p12 = pnand %p3849_p11, %p3846_p10 }
  0x3a   :  { %3854 = shalt.err (!%p3851_p12)
}
  0x3b   :  { %s3855_s15 = scalar_lea.vmem %s3971_s22, 6144  ;;  %p3860_p0 = scmp.lt.s32.totalorder %s3971_s22, %s3971_s22 }
  0x3c   :  { %p3856_p13 = scmp.ne.s32.totalorder %s3971_s22, %s3855_s15  ;;  %p3861_p1 = scmp.lt.s32.totalorder %s3855_s15, %s3855_s15 }
  0x3e   :  { %p3862_p2 = por %p3861_p1, %p3860_p0 }
  0x40   :  { %p3863_p3 = pnand %p3862_p2, %p3856_p13 }
  0x42   :  { %3866 = shalt.err (!%p3863_p3)
}
  0x43   :  { %61 = dma.hbm_to_vmem [thread:$0]  %s4324_s3, 6144, %s3971_s22, [#allocation9], %s3899_s30, %s3899_s30, %s3900_s6  }
  0x44   :  { %3889 = dma.done.wait [#allocation3], 768  }
  0x45   :  { %3890 = vsyncadd [#allocation3], 4294966528 }
  0x46   :  { %3891 = dma.done.wait [#allocation6], 1536  }
  0x47   :  { %3892 = vsyncadd [#allocation6], 4294965760 }
  0x48   :  { %3893 = dma.done.wait [#allocation9], 6144  }
  0x49   :  { %3894 = vsyncadd [#allocation9], 4294961152  ;;  %v92_v0 = vld [vmem:[#allocation8 + $0xc0] sm:$0xff]  ;;  %v93_v1 = vld [vmem:[#allocation8 + $0xc8] sm:$0xff]  ;;  %vm100_vm0 = vcmask 523264   ;;  %vm257_vm1 = vcmask 130048  }
  0x4a   :  { %v94_v2 = vld [vmem:[#allocation8 + $0xd0] sm:$0xff]  ;;  %v4008_v3 = vpack.c.bf16 %v93_v1, %v92_v0  ;;  %v95_v4 = vld [vmem:[#allocation8 + $0xd8] sm:$0xff]  ;;  %v96_v6 = vld [vmem:[#allocation8 + $0xe0] sm:$0xff] }
  0x4b   :  { %v4010_v5 = vpack.c.bf16 %v95_v4, %v94_v2  ;;  %v97_v7 = vld [vmem:[#allocation8 + $0xe8] sm:$0xff]  ;;  %v77_v8 = vld [vmem:[#allocation2] sm:$0xff]  ;;  %v4014_v9 = vld [vmem:[#allocation2 + $0x8] sm:$0xff] }
  0x4c   :  { %3407 = vmatprep.subr.bf16.mxu1 %v4008_v3  ;;  %2996 = vmatprep.mubr.msk.f32.mxu1 %vm100_vm0, %v77_v8  ;;  %v3438_v10 = vpack.c.bf16 %v4014_v9, %v77_v8  ;;  %v4018_v11 = vld [vmem:[#allocation5] sm:$0xff]  ;;  %v4021_v12 = vpack.c.bf16 %v97_v7, %v96_v6  ;;  %v98_v13 = vld [vmem:[#allocation8 + $0xf0] sm:$0xff]  ;;  %v99_v14 = vld [vmem:[#allocation8 + $0xf8] sm:$0xff] }
  0x4d   :  { %3409 = vmatpush3.bf16.msra.mxu1 %v4008_v3  ;;  %3022 = vmatprep.mubr.msk.f32.mxu0 %vm257_vm1, %v4018_v11  ;;  %v4025_v15 = vld [vmem:[#allocation5 + $0x8] sm:$0xff]  ;;  %v421_v16 = vld [vmem:[#allocation8 + $0x40] sm:$0xff]  ;;  %v423_v19 = vld [vmem:[#allocation8 + $0x50] sm:$0xff]  ;;  %v4031_v21 = vpack.c.bf16 %v99_v14, %v98_v13 }
  0x4e   :  { %3411 = vmatprep.subr.bf16.mxu1 %v4010_v5  ;;  %3439 = vmatprep.subr.bf16.mxu0 %v3438_v10  ;;  %v422_v17 = vld [vmem:[#allocation8 + $0x48] sm:$0xff]  ;;  %v424_v20 = vld [vmem:[#allocation8 + $0x58] sm:$0xff]  ;;  %v425_v23 = vld [vmem:[#allocation8 + $0x60] sm:$0xff] }
  0x4f   :  { %3441 = vmatpush3.bf16.msra.mxu0 %v3438_v10  ;;  %v4028_v18 = vpack.c.bf16 %v422_v17, %v421_v16  ;;  %v4033_v22 = vpack.c.bf16 %v424_v20, %v423_v19  ;;  %v426_v24 = vld [vmem:[#allocation8 + $0x68] sm:$0xff]  ;;  %v83_v25 = vld [vmem:[#allocation8] sm:$0xff]  ;;  %v85_v29 = vld [vmem:[#allocation8 + $0x10] sm:$0xff] }
  0x50   :  { %v84_v26 = vld [vmem:[#allocation8 + $0x8] sm:$0xff]  ;;  %v4041_v27 = vpack.c.bf16 %v426_v24, %v425_v23  ;;  %v86_v30 = vld [vmem:[#allocation8 + $0x18] sm:$0xff]  ;;  %v427_v31 = vld [vmem:[#allocation8 + $0x70] sm:$0xff] }
  0x51   :  { %3413 = vmatpush3.bf16.msra.mxu1 %v4010_v5  ;;  %3447 = vmatprep.subr.bf16.mxu0 %v4028_v18  ;;  %v4044_v28 = vpack.c.bf16 %v84_v26, %v83_v25  ;;  %v428_v32 = vld [vmem:[#allocation8 + $0x78] sm:$0xff]  ;;  %v4050_v33 = vpack.c.bf16 %v86_v30, %v85_v29  ;;  %v87_v35 = vld [vmem:[#allocation8 + $0x20] sm:$0xff]  ;;  %v88_v36 = vld [vmem:[#allocation8 + $0x28] sm:$0xff] }
  0x52   :  { %3415 = vmatprep.subr.bf16.mxu1 %v4021_v12  ;;  %3023 = vmatmul.mubr.msk.f32.vlgmr.msra.gmra.mrb[0].mxu0 %vm257_vm1, %v4025_v15  ;;  %v4052_v34 = vpack.c.bf16 %v428_v32, %v427_v31  ;;  %v4060_v37 = vpack.c.bf16 %v88_v36, %v87_v35  ;;  %v89_v38 = vld [vmem:[#allocation8 + $0x30] sm:$0xff]  ;;  %v90_v39 = vld [vmem:[#allocation8 + $0x38] sm:$0xff]  ;;  %v513_v43 = vld [vmem:[#allocation8 + $0x100] sm:$0xff] }
  0x53   :  { %3449 = vmatpush3.bf16.msra.mxu0 %v4028_v18  ;;  %v4066_v40 = vpack.c.bf16 %v90_v39, %v89_v38  ;;  %v81_v41 = vld [vmem:[#allocation7] sm:$0xff]  ;;  %v82_v42 = vld [vmem:[#allocation7 + $0x8] sm:$0xff]  ;;  %v514_v44 = vld [vmem:[#allocation8 + $0x108] sm:$0xff] }
  0x54   :  { %3451 = vmatprep.subr.bf16.mxu0 %v4033_v22  ;;  %v4077_v45 = vpack.c.bf16 %v514_v44, %v513_v43  ;;  %v515_v46 = vld [vmem:[#allocation8 + $0x110] sm:$0xff]  ;;  %v516_v47 = vld [vmem:[#allocation8 + $0x118] sm:$0xff]  ;;  %v517_v52 = vld [vmem:[#allocation8 + $0x120] sm:$0xff] }
  0x55   :  { %3417 = vmatpush3.bf16.msra.mxu1 %v4021_v12  ;;  %v4080_v50 = vpack.c.bf16 %v516_v47, %v515_v46  ;;  %v518_v53 = vld [vmem:[#allocation8 + $0x128] sm:$0xff]  ;;  %v519_v55 = vld [vmem:[#allocation8 + $0x130] sm:$0xff]  ;;  %v520_v56 = vld [vmem:[#allocation8 + $0x138] sm:$0xff] }
  0x56   :  { %3419 = vmatprep.subr.bf16.mxu1 %v4031_v21  ;;  %v4086_v54 = vpack.c.bf16 %v518_v53, %v517_v52  ;;  %v4092_v57 = vpack.c.bf16 %v520_v56, %v519_v55  ;;  %v755_v58 = vld [vmem:[#allocation8 + $0x80] sm:$0xff]  ;;  %v756_v59 = vld [vmem:[#allocation8 + $0x88] sm:$0xff]  ;;  %v757_v63 = vld [vmem:[#allocation8 + $0x90] sm:$0xff] }
  0x57   :  { %3453 = vmatpush3.bf16.msra.mxu0 %v4033_v22  ;;  %v4097_v60 = vpack.c.bf16 %v756_v59, %v755_v58  ;;  %v758_v0 = vld [vmem:[#allocation8 + $0x98] sm:$0xff]  ;;  %v759_v7 = vld [vmem:[#allocation8 + $0xa0] sm:$0xff]  ;;  %v4140_v17 = vld [vmem:[#allocation5 + $0x10] sm:$0xff] }
  0x58   :  { %3455 = vmatprep.subr.bf16.mxu0 %v4041_v27  ;;  %v4105_v4 = vpack.c.bf16 %v758_v0, %v757_v63  ;;  %v762_v13 = vld [vmem:[#allocation8 + $0xb8] sm:$0xff]  ;;  %v4147_v20 = vld [vmem:[#allocation7 + $0x10] sm:$0xff]  ;;  %v4153_v23 = vld [vmem:[#allocation7 + $0x18] sm:$0xff] }
  0x59   :  { %3421 = vmatpush3.bf16.msra.mxu1 %v4031_v21  ;;  %v4145_v19 = vld [vmem:[#allocation5 + $0x18] sm:$0xff]  ;;  %v847_v24 = vld [vmem:[#allocation8 + $0x140] sm:$0xff]  ;;  %v848_v25 = vld [vmem:[#allocation8 + $0x148] sm:$0xff] }
  0x5a   :  { %3423 = vmatprep.subr.bf16.mxu1 %v4044_v28  ;;  %v4166_v26 = vpack.c.bf16 %v848_v25, %v847_v24  ;;  %v849_v29 = vld [vmem:[#allocation8 + $0x150] sm:$0xff]  ;;  %v850_v30 = vld [vmem:[#allocation8 + $0x158] sm:$0xff]  ;;  %v851_v36 = vld [vmem:[#allocation8 + $0x160] sm:$0xff] }
  0x5b   :  { %3457 = vmatpush3.bf16.msra.mxu0 %v4041_v27  ;;  %v4169_v35 = vpack.c.bf16 %v850_v30, %v849_v29  ;;  %v852_v38 = vld [vmem:[#allocation8 + $0x168] sm:$0xff] }
  0x5c   :  { %2997 = vmatmul.mubr.msk.f32.vlgmr.msra.gmra.mrb[0].mxu1 %vm100_vm0, %v4014_v9  ;;  %3459 = vmatprep.subr.bf16.mxu0 %v4052_v34  ;;  %v4175_v39 = vpack.c.bf16 %v852_v38, %v851_v36  ;;  %v1815_v53 = vld [vmem:[#allocation5 + $0x28] sm:$0xff] }
  0x5d   :  { %3425 = vmatpush3.bf16.msra.mxu1 %v4044_v28  ;;  %3015 = vmatprep.mubr.msk.f32.mxu1 %vm100_vm0, %v77_v8  ;;  %v760_v8 = vld [vmem:[#allocation8 + $0xa8] sm:$0xff] }
  0x5e   :  { %3427 = vmatprep.subr.bf16.mxu1 %v4050_v33 }
  0x5f   :  { %3461 = vmatpush3.bf16.msra.mxu0 %v4052_v34 }
  0x60   :  { %3463 = vmatprep.subr.bf16.mxu0 %v4077_v45 }
  0x61   :  { %3429 = vmatpush3.bf16.msra.mxu1 %v4050_v33 }
  0x62   :  { %3431 = vmatprep.subr.bf16.mxu1 %v4060_v37 }
  0x65   :  { %3433 = vmatpush3.bf16.msra.mxu1 %v4060_v37 }
  0x66   :  { %3435 = vmatprep.subr.bf16.mxu1 %v4066_v40 }
  0x69   :  { %3437 = vmatpush3.bf16.msra.mxu1 %v4066_v40 }
  0x6a   :  { %3443 = vmatprep.subr.bf16.mxu1 %v3438_v10 }
  0x6c   :  { %3016 = vmatmul.mubr.msk.f32.vlgmr.msra.gmra.mrb[0].mxu1 %vm100_vm0, %v4014_v9  ;;  %v949_v9 = vld [vmem:[#allocation2 + $0x10] sm:$0xff] }
  0x6d   :  { %3445 = vmatpush3.bf16.msra.mxu1 %v3438_v10  ;;  %3029 = vmatprep.mubr.msk.f32.mxu1 %vm257_vm1, %v81_v41  ;;  %v4112_v10 = vpack.c.bf16 %v760_v8, %v759_v7 }
  0x70   :  { %3030 = vmatmul.mubr.msk.f32.vlgmr.msra.gmra.mrb[2].mxu1 %vm257_vm1, %v82_v42 }
  0x71   :  { %3074 = vmatprep.mubr.msk.f32.mxu1 %vm257_vm1, %v4018_v11  ;;  %v761_v11 = vld [vmem:[#allocation8 + $0xb0] sm:$0xff] }
  0x72   :  { %v4118_v14 = vpack.c.bf16 %v762_v13, %v761_v11 }
 0x125   :  { %v3024_v48 = vpop.f32.mrb[0].mxu0 }
 0x126   :  { %v330_v49 = vpop.f32.mrb[1].mxu0 }
 0x127   :  { %v3478_v51 = vpack.c.bf16 %v3024_v48, %v330_v49  ;;  %3048 = vmatprep.mubr.msk.f32.mxu0 %vm100_vm0, %v330_v49 }
 0x128   :  { %3049 = vmatmul.mubr.msk.f32.vlgmr.msra.gmra.mrb[2].mxu0 %vm100_vm0, %v3024_v48 }
 0x129   :  { %3465 = vmatpush3.bf16.msra.mxu0 %v4077_v45  ;;  %3479 = vmatprep.subr.bf16.mxu1 %v3478_v51 }
 0x12a   :  { %3481 = vmatpush3.bf16.msra.mxu1 %v3478_v51  ;;  %3467 = vmatprep.subr.bf16.mxu0 %v4080_v50  ;;  %v1812_v51 = vld [vmem:[#allocation2 + $0x28] sm:$0xff] }
 0x12d   :  { %3469 = vmatpush3.bf16.msra.mxu0 %v4080_v50  ;;  %3075 = vmatmul.mubr.msk.f32.vlgmr.msra.gmra.mrb[4].mxu1 %vm257_vm1, %v4025_v15  ;;  %v950_v15 = vld [vmem:[#allocation2 + $0x18] sm:$0xff] }
 0x12e   :  { %3471 = vmatprep.subr.bf16.mxu0 %v4086_v54  ;;  %3081 = vmatprep.mubr.msk.f32.mxu1 %vm257_vm1, %v81_v41  ;;  %v3550_v16 = vpack.c.bf16 %v950_v15, %v949_v9  ;;  %v853_v41 = vld [vmem:[#allocation8 + $0x170] sm:$0xff] }
 0x131   :  { %3473 = vmatpush3.bf16.msra.mxu0 %v4086_v54 }
 0x132   :  { %3475 = vmatprep.subr.bf16.mxu0 %v4092_v57 }
 0x135   :  { %3477 = vmatpush3.bf16.msra.mxu0 %v4092_v57 }
 0x136   :  { %3487 = vmatprep.subr.bf16.mxu0 %v4097_v60 }
 0x13f   :  { %v4101_v61 = vpop.f32.mrb[0].mxu1 }
 0x140   :  { %v4103_v62 = vpop.f32.mrb[1].mxu1 }
 0x143   :  { %v3031_v1 = vpop.f32.mrb[2].mxu1 }
 0x144   :  { %v411_v2 = vpop.f32.mrb[3].mxu1 }
 0x145   :  { %v3482_v6 = vpack.c.bf16 %v3031_v1, %v411_v2  ;;  %3067 = vmatprep.mubr.msk.f32.mxu0 %vm100_vm0, %v411_v2 }
 0x146   :  { %3068 = vmatmul.mubr.msk.f32.vlgmr.msra.gmra.mrb[2].mxu0 %vm100_vm0, %v3031_v1 }
 0x147   :  { %3483 = vmatprep.subr.bf16.mxu1 %v3482_v6  ;;  %3489 = vmatpush3.bf16.msra.mxu0 %v4097_v60 }
 0x148   :  { %3485 = vmatpush3.bf16.msra.mxu1 %v3482_v6  ;;  %3491 = vmatprep.subr.bf16.mxu0 %v4105_v4 }
 0x149   :  { %3519 = vmatprep.subr.bf16.mxu1 %v4008_v3 }
 0x14b   :  { %3082 = vmatmul.mubr.msk.f32.vlgmr.msra.gmra.mrb[6].mxu1 %vm257_vm1, %v82_v42  ;;  %3493 = vmatpush3.bf16.msra.mxu0 %v4105_v4  ;;  %v854_v42 = vld [vmem:[#allocation8 + $0x178] sm:$0xff] }
 0x14c   :  { %3521 = vmatpush3.bf16.msra.mxu1 %v4008_v3  ;;  %3138 = vmatprep.mubr.msk.f32.mxu1 %vm100_vm0, %v949_v9  ;;  %v4179_v43 = vpack.c.bf16 %v854_v42, %v853_v41 }
 0x14d   :  { %3523 = vmatprep.subr.bf16.mxu1 %v4010_v5  ;;  %3495 = vmatprep.subr.bf16.mxu0 %v4112_v10 }
 0x14f   :  { %3497 = vmatpush3.bf16.msra.mxu0 %v4112_v10 }
 0x150   :  { %3525 = vmatpush3.bf16.msra.mxu1 %v4010_v5  ;;  %3499 = vmatprep.subr.bf16.mxu0 %v4118_v14 }
 0x151   :  { %3527 = vmatprep.subr.bf16.mxu1 %v4021_v12 }
 0x153   :  { %3501 = vmatpush3.bf16.msra.mxu0 %v4118_v14 }
 0x154   :  { %3529 = vmatpush3.bf16.msra.mxu1 %v4021_v12  ;;  %3503 = vmatprep.subr.bf16.mxu0 %v4166_v26 }
 0x155   :  { %3531 = vmatprep.subr.bf16.mxu1 %v4031_v21 }
 0x158   :  { %3533 = vmatpush3.bf16.msra.mxu1 %v4031_v21 }
 0x159   :  { %3535 = vmatprep.subr.bf16.mxu1 %v4044_v28 }
 0x15b   :  { %3139 = vmatmul.mubr.msk.f32.vlgmr.msra.gmra.mrb[8].mxu1 %vm100_vm0, %v950_v15 }
 0x15c   :  { %3537 = vmatpush3.bf16.msra.mxu1 %v4044_v28  ;;  %3157 = vmatprep.mubr.msk.f32.mxu1 %vm100_vm0, %v949_v9 }
 0x15d   :  { %3539 = vmatprep.subr.bf16.mxu1 %v4050_v33 }
 0x160   :  { %3541 = vmatpush3.bf16.msra.mxu1 %v4050_v33 }
 0x161   :  { %3543 = vmatprep.subr.bf16.mxu1 %v4060_v37 }
 0x164   :  { %3545 = vmatpush3.bf16.msra.mxu1 %v4060_v37 }
 0x165   :  { %3547 = vmatprep.subr.bf16.mxu1 %v4066_v40 }
 0x168   :  { %3549 = vmatpush3.bf16.msra.mxu1 %v4066_v40 }
 0x169   :  { %3551 = vmatprep.subr.bf16.mxu1 %v3550_v16 }
 0x16b   :  { %3158 = vmatmul.mubr.msk.f32.vlgmr.msra.gmra.mrb[8].mxu1 %vm100_vm0, %v950_v15 }
 0x16c   :  { %3553 = vmatpush3.bf16.msra.mxu1 %v3550_v16  ;;  %3164 = vmatprep.mubr.msk.f32.mxu1 %vm257_vm1, %v4140_v17 }
 0x16d   :  { %3555 = vmatprep.subr.bf16.mxu1 %v3550_v16 }
 0x16f   :  { %3165 = vmatmul.mubr.msk.f32.vlgmr.msra.gmra.mrb[10].mxu1 %vm257_vm1, %v4145_v19 }
 0x170   :  { %3557 = vmatpush3.bf16.msra.mxu1 %v3550_v16  ;;  %3171 = vmatprep.mubr.msk.f32.mxu1 %vm257_vm1, %v4147_v20 }
 0x171   :  { %3559 = vmatprep.subr.bf16.mxu1 %v4028_v18 }
 0x173   :  { %3172 = vmatmul.mubr.msk.f32.vlgmr.msra.gmra.mrb[12].mxu1 %vm257_vm1, %v4153_v23 }
 0x174   :  { %3561 = vmatpush3.bf16.msra.mxu1 %v4028_v18 }
 0x175   :  { %3563 = vmatprep.subr.bf16.mxu1 %v4033_v22 }
 0x178   :  { %3565 = vmatpush3.bf16.msra.mxu1 %v4033_v22 }
 0x179   :  { %3567 = vmatprep.subr.bf16.mxu1 %v4041_v27 }
 0x17c   :  { %3569 = vmatpush3.bf16.msra.mxu1 %v4041_v27 }
 0x17d   :  { %3571 = vmatprep.subr.bf16.mxu1 %v4052_v34 }
 0x180   :  { %3573 = vmatpush3.bf16.msra.mxu1 %v4052_v34 }
 0x181   :  { %3575 = vmatprep.subr.bf16.mxu1 %v4077_v45 }
 0x200   :  { %v3076_v31 = vpop.f32.mrb[4].mxu1 }
 0x201   :  { %v670_v32 = vpop.f32.mrb[5].mxu1 }
 0x202   :  { %3100 = vmatprep.mubr.msk.f32.mxu0 %vm100_vm0, %v670_v32 }
 0x203   :  { %3101 = vmatmul.mubr.msk.f32.vlgmr.msra.gmra.mrb[2].mxu0 %vm100_vm0, %v3076_v31 }
 0x204   :  { %3505 = vmatpush3.bf16.msra.mxu0 %v4166_v26 }
 0x205   :  { %3507 = vmatprep.subr.bf16.mxu0 %v4169_v35 }
 0x208   :  { %3509 = vmatpush3.bf16.msra.mxu0 %v4169_v35 }
 0x209   :  { %3511 = vmatprep.subr.bf16.mxu0 %v4175_v39 }
 0x20c   :  { %3513 = vmatpush3.bf16.msra.mxu0 %v4175_v39 }
 0x20d   :  { %3515 = vmatprep.subr.bf16.mxu0 %v4179_v43 }
 0x210   :  { %3517 = vmatpush3.bf16.msra.mxu0 %v4179_v43 }
 0x211   :  { %3631 = vmatprep.subr.bf16.mxu0 %v4008_v3 }
 0x21e   :  { %v3083_v44 = vpop.f32.mrb[6].mxu1 }
 0x21f   :  { %v745_v46 = vpop.f32.mrb[7].mxu1 }
 0x220   :  { %3119 = vmatprep.mubr.msk.f32.mxu0 %vm100_vm0, %v745_v46 }
 0x221   :  { %3120 = vmatmul.mubr.msk.f32.vlgmr.msra.gmra.mrb[2].mxu0 %vm100_vm0, %v3083_v44 }
 0x222   :  { %3633 = vmatpush3.bf16.msra.mxu0 %v4008_v3 }
 0x223   :  { %3635 = vmatprep.subr.bf16.mxu0 %v4010_v5 }
 0x226   :  { %3637 = vmatpush3.bf16.msra.mxu0 %v4010_v5 }
 0x227   :  { %3639 = vmatprep.subr.bf16.mxu0 %v4021_v12 }
 0x22a   :  { %3641 = vmatpush3.bf16.msra.mxu0 %v4021_v12 }
 0x22b   :  { %3643 = vmatprep.subr.bf16.mxu0 %v4031_v21 }
 0x22e   :  { %3645 = vmatpush3.bf16.msra.mxu0 %v4031_v21  ;;  %v1811_v21 = vld [vmem:[#allocation2 + $0x20] sm:$0xff] }
 0x22f   :  { %3647 = vmatprep.subr.bf16.mxu0 %v4044_v28  ;;  %3280 = vmatprep.mubr.msk.f32.mxu0 %vm100_vm0, %v1811_v21  ;;  %v3662_v52 = vpack.c.bf16 %v1812_v51, %v1811_v21 }
 0x231   :  { %3281 = vmatmul.mubr.msk.f32.vlgmr.msra.gmra.mrb[4].mxu0 %vm100_vm0, %v1812_v51 }
 0x232   :  { %3649 = vmatpush3.bf16.msra.mxu0 %v4044_v28  ;;  %3299 = vmatprep.mubr.msk.f32.mxu0 %vm100_vm0, %v1811_v21  ;;  %v1814_v28 = vld [vmem:[#allocation5 + $0x20] sm:$0xff] }
 0x233   :  { %3651 = vmatprep.subr.bf16.mxu0 %v4050_v33 }
 0x236   :  { %3653 = vmatpush3.bf16.msra.mxu0 %v4050_v33  ;;  %v4248_v33 = vld [vmem:[%s4325_s4] ss:$0 sm:$0xff]  ;;  %s3903_s4 = smov [#allocation10]  }
 0x237   :  { %3655 = vmatprep.subr.bf16.mxu0 %v4060_v37  ;;  %s2677_s17 = sshll.u32 %s3903_s4, 4  ;;  %s2678_s17 = int_to_ptr.vmem [resolvable:$true] %s2677_s17 }
 0x238   :  { %s3867_s18 = scalar_lea.vmem %s2678_s17, 768  ;;  %p3872_p5 = scmp.lt.s32.totalorder %s2678_s17, %s2678_s17 }
 0x239   :  { %p3868_p4 = scmp.ne.s32.totalorder %s2678_s17, %s3867_s18  ;;  %p3873_p6 = scmp.lt.s32.totalorder %s3867_s18, %s3867_s18 }
 0x23a   :  { %3657 = vmatpush3.bf16.msra.mxu0 %v4060_v37 }
 0x23b   :  { %3659 = vmatprep.subr.bf16.mxu0 %v4066_v40  ;;  %p3874_p7 = por %p3873_p6, %p3872_p5 }
 0x23d   :  { %p3875_p8 = pnand %p3874_p7, %p3868_p4 }
 0x23e   :  { %3661 = vmatpush3.bf16.msra.mxu0 %v4066_v40 }
 0x23f   :  { %3663 = vmatprep.subr.bf16.mxu0 %v3662_v52 }
 0x241   :  { %3300 = vmatmul.mubr.msk.f32.vlgmr.msra.gmra.mrb[4].mxu0 %vm100_vm0, %v1812_v51 }
 0x242   :  { %v3166_v47 = vpop.f32.mrb[10].mxu1  ;;  %3665 = vmatpush3.bf16.msra.mxu0 %v3662_v52  ;;  %3306 = vmatprep.mubr.msk.f32.mxu0 %vm257_vm1, %v1814_v28 }
 0x243   :  { %v1201_v48 = vpop.f32.mrb[11].mxu1  ;;  %3671 = vmatprep.subr.bf16.mxu0 %v4028_v18 }
 0x244   :  { %v3590_v49 = vpack.c.bf16 %v3166_v47, %v1201_v48  ;;  %3190 = vmatprep.mubr.msk.f32.mxu1 %vm100_vm0, %v1201_v48 }
 0x245   :  { %3191 = vmatmul.mubr.msk.f32.vlgmr.msra.gmra.mrb[8].mxu1 %vm100_vm0, %v3166_v47  ;;  %3307 = vmatmul.mubr.msk.f32.vlgmr.msra.gmra.mrb[6].mxu0 %vm257_vm1, %v1815_v53 }
 0x246   :  { %3577 = vmatpush3.bf16.msra.mxu1 %v4077_v45  ;;  %v3173_v3 = vpop.f32.mrb[12].mxu1  ;;  %3673 = vmatpush3.bf16.msra.mxu0 %v4028_v18 }
 0x247   :  { %3579 = vmatprep.subr.bf16.mxu1 %v4080_v50  ;;  %v1282_v5 = vpop.f32.mrb[13].mxu1  ;;  %3675 = vmatprep.subr.bf16.mxu0 %v4033_v22 }
 0x248   :  { %v3594_v12 = vpack.c.bf16 %v3173_v3, %v1282_v5  ;;  %3209 = vmatprep.mubr.msk.f32.mxu1 %vm100_vm0, %v1282_v5 }
 0x24a   :  { %3581 = vmatpush3.bf16.msra.mxu1 %v4080_v50  ;;  %3677 = vmatpush3.bf16.msra.mxu0 %v4033_v22 }
 0x24b   :  { %3583 = vmatprep.subr.bf16.mxu1 %v4086_v54  ;;  %3679 = vmatprep.subr.bf16.mxu0 %v4041_v27 }
 0x24e   :  { %3585 = vmatpush3.bf16.msra.mxu1 %v4086_v54  ;;  %3681 = vmatpush3.bf16.msra.mxu0 %v4041_v27 }
 0x24f   :  { %3587 = vmatprep.subr.bf16.mxu1 %v4092_v57  ;;  %3683 = vmatprep.subr.bf16.mxu0 %v4052_v34 }
 0x252   :  { %3589 = vmatpush3.bf16.msra.mxu1 %v4092_v57  ;;  %3685 = vmatpush3.bf16.msra.mxu0 %v4052_v34 }
 0x253   :  { %3591 = vmatprep.subr.bf16.mxu1 %v3590_v49  ;;  %3687 = vmatprep.subr.bf16.mxu0 %v4077_v45 }
 0x255   :  { %3210 = vmatmul.mubr.msk.f32.vlgmr.msra.gmra.mrb[8].mxu1 %vm100_vm0, %v3173_v3 }
 0x256   :  { %3593 = vmatpush3.bf16.msra.mxu1 %v3590_v49  ;;  %3216 = vmatprep.mubr.msk.f32.mxu1 %vm257_vm1, %v4140_v17 }
 0x257   :  { %3595 = vmatprep.subr.bf16.mxu1 %v3594_v12 }
 0x259   :  { %3217 = vmatmul.mubr.msk.f32.vlgmr.msra.gmra.mrb[14].mxu1 %vm257_vm1, %v4145_v19 }
 0x25a   :  { %3597 = vmatpush3.bf16.msra.mxu1 %v3594_v12  ;;  %3223 = vmatprep.mubr.msk.f32.mxu1 %vm257_vm1, %v4147_v20 }
 0x25b   :  { %3599 = vmatprep.subr.bf16.mxu1 %v4097_v60 }
 0x25d   :  { %3224 = vmatmul.mubr.msk.f32.vlgmr.msra.gmra.mrb[16].mxu1 %vm257_vm1, %v4153_v23 }
 0x25e   :  { %3601 = vmatpush3.bf16.msra.mxu1 %v4097_v60 }
 0x25f   :  { %3603 = vmatprep.subr.bf16.mxu1 %v4105_v4 }
 0x262   :  { %3605 = vmatpush3.bf16.msra.mxu1 %v4105_v4 }
 0x263   :  { %3607 = vmatprep.subr.bf16.mxu1 %v4112_v10 }
 0x266   :  { %3609 = vmatpush3.bf16.msra.mxu1 %v4112_v10 }
 0x267   :  { %3611 = vmatprep.subr.bf16.mxu1 %v4118_v14 }
 0x26a   :  { %3613 = vmatpush3.bf16.msra.mxu1 %v4118_v14 }
 0x26b   :  { %3615 = vmatprep.subr.bf16.mxu1 %v4166_v26 }
 0x2f4   :  { %v3121_v18 = vpop.f32.mrb[2].mxu0 }
 0x2f5   :  { %v3742_v37 = vadd.f32 %v3121_v18, %v4101_v61  ;;  %v927_v40 = vpop.f32.mrb[3].mxu0  ;;  %v1817_v61 = vld [vmem:[#allocation7 + $0x20] sm:$0xff] }
 0x2f6   :  { %v3743_v22 = vadd.f32 %v927_v40, %v4103_v62  ;;  %v1818_v62 = vld [vmem:[#allocation7 + $0x28] sm:$0xff] }
 0x2f7   :  { %v945_v55 = vadd.f32 %v3742_v37, %v4248_v33 }
 0x2f8   :  { %v944_v27 = vadd.f32 %v3743_v22, %v4248_v33 }
 0x2f9   :  { %947 = vst [vmem:[#allocation10 + $0x8] sm:$0xff] %v945_v55 }
 0x2fa   :  { %946 = vst [vmem:[#allocation10] sm:$0xff] %v944_v27 }
 0x318   :  { %v3308_v63 = vpop.f32.mrb[6].mxu0 }
 0x319   :  { %v2063_v0 = vpop.f32.mrb[7].mxu0 }
 0x31a   :  { %v3702_v1 = vpack.c.bf16 %v3308_v63, %v2063_v0  ;;  %3332 = vmatprep.mubr.msk.f32.mxu0 %vm100_vm0, %v2063_v0 }
 0x31b   :  { %3333 = vmatmul.mubr.msk.f32.vlgmr.msra.gmra.mrb[4].mxu0 %vm100_vm0, %v3308_v63 }
 0x31c   :  { %3689 = vmatpush3.bf16.msra.mxu0 %v4077_v45 }
 0x31d   :  { %3691 = vmatprep.subr.bf16.mxu0 %v4080_v50 }
 0x320   :  { %3693 = vmatpush3.bf16.msra.mxu0 %v4080_v50 }
 0x321   :  { %3695 = vmatprep.subr.bf16.mxu0 %v4086_v54 }
 0x324   :  { %3697 = vmatpush3.bf16.msra.mxu0 %v4086_v54 }
 0x325   :  { %3699 = vmatprep.subr.bf16.mxu0 %v4092_v57 }
 0x328   :  { %3701 = vmatpush3.bf16.msra.mxu0 %v4092_v57 }
 0x329   :  { %3711 = vmatprep.subr.bf16.mxu0 %v4097_v60 }
 0x32c   :  { %v3218_v34 = vpop.f32.mrb[14].mxu1 }
 0x32d   :  { %v1539_v56 = vpop.f32.mrb[15].mxu1 }
 0x32e   :  { %3242 = vmatprep.mubr.msk.f32.mxu1 %vm100_vm0, %v1539_v56 }
 0x32f   :  { %3243 = vmatmul.mubr.msk.f32.vlgmr.msra.gmra.mrb[8].mxu1 %vm100_vm0, %v3218_v34 }
 0x330   :  { %3617 = vmatpush3.bf16.msra.mxu1 %v4166_v26  ;;  %v3225_v58 = vpop.f32.mrb[16].mxu1 }
 0x331   :  { %3619 = vmatprep.subr.bf16.mxu1 %v4169_v35  ;;  %v1614_v59 = vpop.f32.mrb[17].mxu1 }
 0x332   :  { %3261 = vmatprep.mubr.msk.f32.mxu1 %vm100_vm0, %v1614_v59 }
 0x334   :  { %3621 = vmatpush3.bf16.msra.mxu1 %v4169_v35 }
 0x335   :  { %3623 = vmatprep.subr.bf16.mxu1 %v4175_v39 }
 0x338   :  { %3625 = vmatpush3.bf16.msra.mxu1 %v4175_v39 }
 0x339   :  { %3627 = vmatprep.subr.bf16.mxu1 %v4179_v43 }
 0x33c   :  { %3629 = vmatpush3.bf16.msra.mxu1 %v4179_v43 }
 0x33d   :  { %3667 = vmatprep.subr.bf16.mxu1 %v3662_v52 }
 0x33f   :  { %3262 = vmatmul.mubr.msk.f32.vlgmr.msra.gmra.mrb[8].mxu1 %vm100_vm0, %v3225_v58 }
 0x340   :  { %3669 = vmatpush3.bf16.msra.mxu1 %v3662_v52  ;;  %3313 = vmatprep.mubr.msk.f32.mxu1 %vm257_vm1, %v1817_v61 }
 0x341   :  { %3703 = vmatprep.subr.bf16.mxu1 %v3702_v1 }
 0x343   :  { %3314 = vmatmul.mubr.msk.f32.vlgmr.msra.gmra.mrb[18].mxu1 %vm257_vm1, %v1818_v62 }
 0x344   :  { %3358 = vmatprep.mubr.msk.f32.mxu1 %vm257_vm1, %v1814_v28  ;;  %3705 = vmatpush3.bf16.msra.mxu1 %v3702_v1 }
 0x347   :  { %3359 = vmatmul.mubr.msk.f32.vlgmr.msra.gmra.mrb[20].mxu1 %vm257_vm1, %v1815_v53 }
 0x348   :  { %3365 = vmatprep.mubr.msk.f32.mxu1 %vm257_vm1, %v1817_v61 }
 0x412   :  { %v3263_v45 = vpop.f32.mrb[8].mxu1 }
 0x413   :  { %v1806_v2 = vadd.f32 %v3263_v45, %v4248_v33  ;;  %v1794_v6 = vpop.f32.mrb[9].mxu1 }
 0x414   :  { %v1805_v50 = vadd.f32 %v4248_v33, %v1794_v6 }
 0x415   :  { %1809 = vst [vmem:[#allocation10 + $0x18] sm:$0xff] %v1806_v2 }
 0x416   :  { %1808 = vst [vmem:[#allocation10 + $0x10] sm:$0xff] %v1805_v50  ;;  %v3315_v7 = vpop.f32.mrb[18].mxu1 }
 0x417   :  { %v2144_v8 = vpop.f32.mrb[19].mxu1 }
 0x418   :  { %v3706_v9 = vpack.c.bf16 %v3315_v7, %v2144_v8  ;;  %3351 = vmatprep.mubr.msk.f32.mxu0 %vm100_vm0, %v2144_v8 }
 0x419   :  { %3352 = vmatmul.mubr.msk.f32.vlgmr.msra.gmra.mrb[4].mxu0 %vm100_vm0, %v3315_v7 }
 0x41a   :  { %3707 = vmatprep.subr.bf16.mxu1 %v3706_v9  ;;  %3713 = vmatpush3.bf16.msra.mxu0 %v4097_v60  ;;  %v3360_v54 = vpop.f32.mrb[20].mxu1 }
 0x41b   :  { %3709 = vmatpush3.bf16.msra.mxu1 %v3706_v9  ;;  %3715 = vmatprep.subr.bf16.mxu0 %v4105_v4  ;;  %v2401_v57 = vpop.f32.mrb[21].mxu1 }
 0x41c   :  { %3384 = vmatprep.mubr.msk.f32.mxu0 %vm100_vm0, %v2401_v57 }
 0x41e   :  { %3366 = vmatmul.mubr.msk.f32.vlgmr.msra.gmra.mrb[22].mxu1 %vm257_vm1, %v1818_v62  ;;  %3717 = vmatpush3.bf16.msra.mxu0 %v4105_v4 }
 0x41f   :  { %3719 = vmatprep.subr.bf16.mxu0 %v4112_v10 }
 0x422   :  { %3721 = vmatpush3.bf16.msra.mxu0 %v4112_v10 }
 0x423   :  { %3723 = vmatprep.subr.bf16.mxu0 %v4118_v14 }
 0x426   :  { %3725 = vmatpush3.bf16.msra.mxu0 %v4118_v14 }
 0x427   :  { %3727 = vmatprep.subr.bf16.mxu0 %v4166_v26 }
 0x429   :  { %3385 = vmatmul.mubr.msk.f32.vlgmr.msra.gmra.mrb[4].mxu0 %vm100_vm0, %v3360_v54 }
 0x42a   :  { %3729 = vmatpush3.bf16.msra.mxu0 %v4166_v26 }
 0x42b   :  { %3731 = vmatprep.subr.bf16.mxu0 %v4169_v35 }
 0x42e   :  { %3733 = vmatpush3.bf16.msra.mxu0 %v4169_v35 }
 0x42f   :  { %3735 = vmatprep.subr.bf16.mxu0 %v4175_v39 }
 0x432   :  { %3737 = vmatpush3.bf16.msra.mxu0 %v4175_v39 }
 0x433   :  { %3739 = vmatprep.subr.bf16.mxu0 %v4179_v43 }
 0x436   :  { %3741 = vmatpush3.bf16.msra.mxu0 %v4179_v43 }
 0x4f1   :  { %v3367_v60 = vpop.f32.mrb[22].mxu1 }
 0x4f2   :  { %v2476_v4 = vpop.f32.mrb[23].mxu1 }
 0x4f3   :  { %3403 = vmatprep.mubr.msk.f32.mxu0 %vm100_vm0, %v2476_v4 }
 0x4f4   :  { %3404 = vmatmul.mubr.msk.f32.vlgmr.msra.gmra.mrb[4].mxu0 %vm100_vm0, %v3367_v60 }
 0x5c7   :  { %v3405_v10 = vpop.f32.mrb[4].mxu0 }
 0x5c8   :  { %v2668_v11 = vadd.f32 %v3405_v10, %v4248_v33  ;;  %v2656_v13 = vpop.f32.mrb[5].mxu0 }
 0x5c9   :  { %v2667_v14 = vadd.f32 %v4248_v33, %v2656_v13 }
 0x5ca   :  { %2671 = vst [vmem:[#allocation10 + $0x28] sm:$0xff] %v2668_v11 }
 0x5cb   :  { %2670 = vst [vmem:[#allocation10 + $0x20] sm:$0xff] %v2667_v14 }
 0x5cc   :  { %3878 = shalt.err (!%p3875_p8)
}
 0x5cd   :  { %s3879_s22 = scalar_lea.hbm %s4326_s5, 768 }
 0x5ce   :  { %p3880_p9 = scmp.ne.s32.totalorder %s4326_s5, %s3879_s22  ;;  %p3883_p10 = scmp.lt.u32.totalorder %s3879_s22, %s4326_s5 }
 0x5d0   :  { %p3885_p11 = pnand %p3883_p10, %p3880_p9 }
 0x5d2   :  { %3888 = shalt.err (!%p3885_p11)
}
 0x5d3   :  { %2683 = dma.vmem_to_hbm [thread:$0]  %s2678_s17, 768, %s4326_s5, [#allocation4], %s3899_s30, %s3899_s30, %s3900_s6  }
 0x5d4   :  { %3895 = dma.done.wait [#allocation4], 768  }
 0x5d5   :  { %3896 = vsyncadd [#allocation4], 4294966528 }
 0x5d6   :  { %2687 = vsyncpa [#allocation3], 1 }
 0x5d7   :  { %2688 = vsyncpa [#allocation6], 1 }
 0x5d8   :  { %2689 = vsyncpa [#allocation9], 1 }
 0x5d9   :  { %2690 = vsyncpa [#allocation4], 1 }

</bundles_post_ra>
